<compile_context>
chip_gen: v7x
topology: tpu7x:2x2x1
jax: 0.10.0
libtpu: 0.0.40
codegen_flags: <defaults>
</compile_context>

<pallas_src>
import jax
import jax.numpy as jnp
from jax import lax
from jax.experimental import pallas as pl
from jax.experimental.pallas import tpu as pltpu

EPS = 1e-5


# ---------------------------------------------------------------------------
# Small helpers.
# ---------------------------------------------------------------------------
def _nbytes(shape, dtype):
    n = 1
    for d in shape:
        n *= int(d)
    return n * jnp.dtype(dtype).itemsize


def _mosaic_params(block_bytes, scratch_bytes=0):
    """Explicit VMEM budget: 2x (double-buffered) blocks + scratch + headroom."""
    need = 2 * block_bytes + scratch_bytes + (2 << 20)
    limit = int(min(100 << 20, max(need, 16 << 20)))
    return pltpu.CompilerParams(dimension_semantics=("parallel",),
                                vmem_limit_bytes=limit)


def bn_scale_shift(sums, count, gamma, beta):
    """Fold train-mode BN (biased variance, eps=1e-5) into y = x*scale + shift."""
    mean = sums[0] / count
    var = sums[1] / count - mean * mean
    inv = lax.rsqrt(var + EPS)
    scale = (gamma * inv).astype(jnp.float32)
    shift = (beta - mean * gamma * inv).astype(jnp.float32)
    return scale.reshape(1, -1), shift.reshape(1, -1)


# ---------------------------------------------------------------------------
# Kernel 1: bn1 batch statistics -- per-batch partial [sum, sum_sq] over (H, W).
# Grid-parallel; the tiny (N, 2, C) partial array is reduced over N by XLA.
# ---------------------------------------------------------------------------
def _stats_kernel(x_ref, o_ref):
    x = x_ref[0].astype(jnp.float32)              # (H, W, C)
    x2d = x.reshape(-1, x.shape[-1])              # (H*W, C)
    s = jnp.sum(x2d, axis=0, keepdims=True)
    ss = jnp.sum(x2d * x2d, axis=0, keepdims=True)
    o_ref[0] = jnp.concatenate([s, ss], axis=0)   # single (2, C) store


def channel_partial_sums(x):
    N, H, W, C = x.shape
    block_bytes = _nbytes((1, H, W, C), x.dtype) + _nbytes((1, 2, C), jnp.float32)
    return pl.pallas_call(
        _stats_kernel,
        out_shape=jax.ShapeDtypeStruct((N, 2, C), jnp.float32),
        grid=(N,),
        in_specs=[pl.BlockSpec((1, H, W, C), lambda n: (n, 0, 0, 0))],
        out_specs=pl.BlockSpec((1, 2, C), lambda n: (n, 0, 0)),
        compiler_params=_mosaic_params(block_bytes),
    )(x)


# ---------------------------------------------------------------------------
# Shared in-kernel helpers.
# ---------------------------------------------------------------------------
def _shift_w(a, d):
    """Shift (H, W, C) f32 value by d in {+1, -1} along W with zero fill.
    Uses an XLU roll + VPU mask: no sublane-misaligned scratch writes."""
    H, W, C = a.shape
    col = lax.broadcasted_iota(jnp.int32, (H, W, C), 1)
    rolled = pltpu.roll(a, d % W, axis=1)
    if d > 0:
        return jnp.where(col >= d, rolled, 0.0)
    return jnp.where(col <= W - 1 + d, rolled, 0.0)


def _fill_hpadded(pad_ref, ax):
    """Store ax (H, W, K) bf16 into rows 1..H of the (H+2, W, K) scratch and zero
    the two halo rows.  Padding is along H only (untiled leading dim), so every
    store is a full-width, offset-aligned slab."""
    H = ax.shape[0]
    zrow = jnp.zeros((1,) + tuple(ax.shape[1:]), ax.dtype)
    pad_ref[0:1] = zrow
    pad_ref[H + 1:H + 2] = zrow
    pad_ref[1:H + 1] = ax


def _conv3x3_acc(pad_ref, w_ref, H, Ho, Wo, cin, stride, want_mid):
    """3x3 conv over the H-padded, dx-expanded scratch: 3 matmuls (one per dy)
    with contraction K = 3*cin.  Stride is folded into the slab extraction.
    Returns (acc (Ho*Wo, Cout) f32, middle dx-block of the dy=1 slab or None,
    which equals the stride-subsampled relu(bn(x)) -- reused for the shortcut)."""
    acc = None
    mid = None
    for dy in range(3):
        if stride == 1:
            slab = pad_ref[dy:dy + H]                                   # (H, W, 3*cin)
        else:
            slab = pad_ref[pl.ds(dy, Ho, stride), pl.ds(0, Wo, stride), :]
        if want_mid and dy == 1:
            mid = slab[:, :, cin:2 * cin]
        part = jnp.dot(slab.reshape(Ho * Wo, 3 * cin), w_ref[dy],
                       preferred_element_type=jnp.float32)
        acc = part if acc is None else acc + part
    return acc, mid


# ---------------------------------------------------------------------------
# Kernel 2: conv1 (fused relu(bn1), stride folded in, bf16 o1, fused bn2 partial
# stats, optional strided shortcut activation).
# ---------------------------------------------------------------------------
def _conv1_call(x, scale, shift, w_r, stride, emit_asub):
    N, H, W, Cin = x.shape
    Cout = w_r.shape[-1]
    Ho, Wo = H // stride, W // stride

    def kernel(x_ref, s_ref, b_ref, w_ref, *rest):
        if emit_asub:
            o_ref, st_ref, asub_ref, pad_ref = rest
        else:
            o_ref, st_ref, pad_ref = rest
        xv = x_ref[0].astype(jnp.float32)
        a = jnp.maximum(xv * s_ref[...] + b_ref[...], 0.0)        # relu(bn1(x)), f32
        # dx-expansion along the channel (lane) dim: [tap dx=0 | dx=1 | dx=2].
        ax = jnp.concatenate([_shift_w(a, 1), a, _shift_w(a, -1)],
                             axis=-1).astype(jnp.bfloat16)        # (H, W, 3*Cin)
        _fill_hpadded(pad_ref, ax)
        acc, mid = _conv3x3_acc(pad_ref, w_ref, H, Ho, Wo, Cin, stride, emit_asub)
        o_b = acc.astype(jnp.bfloat16)                            # bf16 o1
        o_ref[0] = o_b.reshape(Ho, Wo, Cout)
        # bn2 partial stats from the (bf16-rounded) conv1 output, fused here so o1
        # never needs a separate HBM stats pass.
        of = o_b.astype(jnp.float32)
        st_ref[0] = jnp.concatenate(
            [jnp.sum(of, axis=0, keepdims=True),
             jnp.sum(of * of, axis=0, keepdims=True)], axis=0)    # (2, Cout)
        if emit_asub:
            asub_ref[0] = mid                                     # bf16 a[::s, ::s]

    out_shapes = [jax.ShapeDtypeStruct((N, Ho, Wo, Cout), jnp.bfloat16),
                  jax.ShapeDtypeStruct((N, 2, Cout), jnp.float32)]
    out_specs = [pl.BlockSpec((1, Ho, Wo, Cout), lambda n: (n, 0, 0, 0)),
                 pl.BlockSpec((1, 2, Cout), lambda n: (n, 0, 0))]
    if emit_asub:
        out_shapes.append(jax.ShapeDtypeStruct((N, Ho, Wo, Cin), jnp.bfloat16))
        out_specs.append(pl.BlockSpec((1, Ho, Wo, Cin), lambda n: (n, 0, 0, 0)))

    block_bytes = (_nbytes((1, H, W, Cin), x.dtype)
                   + 2 * _nbytes((1, Cin), jnp.float32)
                   + _nbytes(w_r.shape, jnp.bfloat16)
                   + sum(_nbytes(s.shape, s.dtype) for s in out_shapes))
    scratch_bytes = _nbytes((H + 2, W, 3 * Cin), jnp.bfloat16)

    return pl.pallas_call(
        kernel,
        out_shape=tuple(out_shapes),
        grid=(N,),
        in_specs=[
            pl.BlockSpec((1, H, W, Cin), lambda n: (n, 0, 0, 0)),
            pl.BlockSpec((1, Cin), lambda n: (0, 0)),
            pl.BlockSpec((1, Cin), lambda n: (0, 0)),
            pl.BlockSpec((3, 3 * Cin, Cout), lambda n: (0, 0, 0)),
        ],
        out_specs=tuple(out_specs),
        scratch_shapes=[pltpu.VMEM((H + 2, W, 3 * Cin), jnp.bfloat16)],
        compiler_params=_mosaic_params(block_bytes, scratch_bytes),
    )(x, scale, shift, w_r)


# ---------------------------------------------------------------------------
# Kernel 3: conv2 (fused relu(bn2), fused projection / identity shortcut and
# residual add).
# ---------------------------------------------------------------------------
def _conv2_call(o1, scale, shift, w_r, sc, wsc):
    N, Ho, Wo, Cp = o1.shape
    Csc = sc.shape[-1]
    proj = wsc is not None

    def kernel(o1_ref, s_ref, b_ref, w_ref, sc_ref, *rest):
        if proj:
            wsc_ref, out_ref, pad_ref = rest
        else:
            out_ref, pad_ref = rest
        v = o1_ref[0].astype(jnp.float32)
        bact = jnp.maximum(v * s_ref[...] + b_ref[...], 0.0)      # relu(bn2(o1))
        bx = jnp.concatenate([_shift_w(bact, 1), bact, _shift_w(bact, -1)],
                             axis=-1).astype(jnp.bfloat16)
        _fill_hpadded(pad_ref, bx)
        acc, _ = _conv3x3_acc(pad_ref, w_ref, Ho, Ho, Wo, Cp, 1, False)
        if proj:
            scv = sc_ref[0].reshape(Ho * Wo, Csc)                 # bf16 a[::s, ::s]
            acc = acc + jnp.dot(scv, wsc_ref[...],
                                preferred_element_type=jnp.float32)
        else:
            acc = acc + sc_ref[0].astype(jnp.float32).reshape(Ho * Wo, Cp)
        out_ref[0] = acc.reshape(Ho, Wo, Cp).astype(out_ref.dtype)

    in_specs = [
        pl.BlockSpec((1, Ho, Wo, Cp), lambda n: (n, 0, 0, 0)),
        pl.BlockSpec((1, Cp), lambda n: (0, 0)),
        pl.BlockSpec((1, Cp), lambda n: (0, 0)),
        pl.BlockSpec((3, 3 * Cp, Cp), lambda n: (0, 0, 0)),
        pl.BlockSpec((1, Ho, Wo, Csc), lambda n: (n, 0, 0, 0)),
    ]
    args = [o1, scale, shift, w_r, sc]
    if proj:
        in_specs.append(pl.BlockSpec((Csc, Cp), lambda n: (0, 0)))
        args.append(wsc)

    block_bytes = (_nbytes((1, Ho, Wo, Cp), o1.dtype)
                   + 2 * _nbytes((1, Cp), jnp.float32)
                   + _nbytes(w_r.shape, jnp.bfloat16)
                   + _nbytes((1, Ho, Wo, Csc), sc.dtype)
                   + (_nbytes(wsc.shape, jnp.bfloat16) if proj else 0)
                   + _nbytes((1, Ho, Wo, Cp), jnp.float32))
    scratch_bytes = _nbytes((Ho + 2, Wo, 3 * Cp), jnp.bfloat16)

    return pl.pallas_call(
        kernel,
        out_shape=jax.ShapeDtypeStruct((N, Ho, Wo, Cp), jnp.float32),
        grid=(N,),
        in_specs=in_specs,
        out_specs=pl.BlockSpec((1, Ho, Wo, Cp), lambda n: (n, 0, 0, 0)),
        scratch_shapes=[pltpu.VMEM((Ho + 2, Wo, 3 * Cp), jnp.bfloat16)],
        compiler_params=_mosaic_params(block_bytes, scratch_bytes),
    )(*args)


# ---------------------------------------------------------------------------
# PreActBlock forward (PyTorch train-mode batch-stat semantics).
# ---------------------------------------------------------------------------
def preact_block_forward_nhwc(x, params, *, in_planes, planes, stride, expansion=1):
    N, H, W, Cin = x.shape
    assert Cin == in_planes
    assert H % stride == 0 and W % stride == 0

    # bn1 batch stats (grid-parallel partials, reduced over N by XLA).
    part1 = channel_partial_sums(x)                                  # (N, 2, Cin)
    scale1, shift1 = bn_scale_shift(jnp.sum(part1, axis=0), N * H * W,
                                    params["bn1_gamma"], params["bn1_beta"])

    # Weights reshaped so the dx taps sit along the contraction dim.
    w1r = params["w1"].reshape(3, 3 * in_planes, planes).astype(jnp.bfloat16)
    w2r = params["w2"].reshape(3, 3 * planes, planes).astype(jnp.bfloat16)
    has_proj = (stride != 1) or (in_planes != expansion * planes)

    res = _conv1_call(x, scale1, shift1, w1r, stride, emit_asub=has_proj)
    o1, st2 = res[0], res[1]                                         # o1: bf16

    Ho, Wo = H // stride, W // stride
    scale2, shift2 = bn_scale_shift(jnp.sum(st2, axis=0), N * Ho * Wo,
                                    params["bn2_gamma"], params["bn2_beta"])

    if has_proj:
        out = _conv2_call(o1, scale2, shift2, w2r, res[2],
                          params["w_sc"].astype(jnp.bfloat16))
    else:
        out = _conv2_call(o1, scale2, shift2, w2r, x, None)
    return out


def preact_block_forward(x_nchw, params, *, in_planes, planes, stride, expansion=1):
    # TODO(synk): prefer the NHWC entry point; this per-block NCHW<->NHWC pair is a
    # full HBM read+write each way and should be done once per network.
    x = jnp.transpose(x_nchw, (0, 2, 3, 1))
    out = preact_block_forward_nhwc(x, params, in_planes=in_planes, planes=planes,
                                    stride=stride, expansion=expansion)
    return jnp.transpose(out, (0, 3, 1, 2))


# ---------------------------------------------------------------------------
# Pure-JAX reference mirroring the kernel numerics (bf16 matmul operands, f32
# accumulation, bf16 o1 intermediate) for validation.
# ---------------------------------------------------------------------------
def _ref_forward(x_nchw, params, *, in_planes, planes, stride, expansion=1):
    x = jnp.transpose(x_nchw, (0, 2, 3, 1)).astype(jnp.float32)
    dn = ("NHWC", "HWIO", "NHWC")

    def bn_stats(v, g, b):
        cnt = v.shape[0] * v.shape[1] * v.shape[2]
        mean = jnp.sum(v, axis=(0, 1, 2)) / cnt
        var = jnp.sum(v * v, axis=(0, 1, 2)) / cnt - mean * mean
        scale = g * lax.rsqrt(var + EPS)
        return scale, b - mean * scale

    s1, b1 = bn_stats(x, params["bn1_gamma"], params["bn1_beta"])
    a = jnp.maximum(x * s1 + b1, 0.0)
    a_b = a.astype(jnp.bfloat16)
    w1 = params["w1"].astype(jnp.bfloat16)
    w2 = params["w2"].astype(jnp.bfloat16)

    if (stride != 1) or (in_planes != expansion * planes):
        wsc = params["w_sc"].reshape(1, 1, in_planes, planes).astype(jnp.bfloat16)
        sc = lax.conv_general_dilated(a_b, wsc, (stride, stride), "VALID",
                                      dimension_numbers=dn,
                                      preferred_element_type=jnp.float32)
    else:
        sc = x
    o1 = lax.conv_general_dilated(a_b, w1, (stride, stride), ((1, 1), (1, 1)),
                                  dimension_numbers=dn,
                                  preferred_element_type=jnp.float32)
    o1 = o1.astype(jnp.bfloat16).astype(jnp.float32)       # mirror bf16 o1 storage
    s2, b2 = bn_stats(o1, params["bn2_gamma"], params["bn2_beta"])
    bact = jnp.maximum(o1 * s2 + b2, 0.0).astype(jnp.bfloat16)
    out = lax.conv_general_dilated(bact, w2, (1, 1), ((1, 1), (1, 1)),
                                   dimension_numbers=dn,
                                   preferred_element_type=jnp.float32) + sc
    return jnp.transpose(out, (0, 3, 1, 2))


def _make_params(key, in_planes, planes):
    ks = jax.random.split(key, 7)
    return {
        "bn1_gamma": 1.0 + 0.1 * jax.random.normal(ks[0], (in_planes,), jnp.float32),
        "bn1_beta":  0.1 * jax.random.normal(ks[1], (in_planes,), jnp.float32),
        "w1":        0.1 * jax.random.normal(ks[2], (3, 3, in_planes, planes), jnp.float32),
        "bn2_gamma": 1.0 + 0.1 * jax.random.normal(ks[3], (planes,), jnp.float32),
        "bn2_beta":  0.1 * jax.random.normal(ks[4], (planes,), jnp.float32),
        "w2":        0.1 * jax.random.normal(ks[5], (3, 3, planes, planes), jnp.float32),
        "w_sc":      0.1 * jax.random.normal(ks[6], (in_planes, planes), jnp.float32),
    }


if __name__ == "__main__":
    key = jax.random.PRNGKey(0)
    configs = [
        dict(N=2, in_planes=4, planes=8, stride=2, H=16, W=16),   # projection shortcut
        dict(N=2, in_planes=8, planes=8, stride=1, H=16, W=16),   # identity shortcut
    ]
    for i, cfg in enumerate(configs):
        kx, kp = jax.random.split(jax.random.fold_in(key, i))
        x = jax.random.normal(kx, (cfg["N"], cfg["in_planes"], cfg["H"], cfg["W"]),
                              jnp.float32)
        params = _make_params(kp, cfg["in_planes"], cfg["planes"])

        out = preact_block_forward(x, params, in_planes=cfg["in_planes"],
                                   planes=cfg["planes"], stride=cfg["stride"])
        out = jax.block_until_ready(out)

        Ho, Wo = cfg["H"] // cfg["stride"], cfg["W"] // cfg["stride"]
        assert out.shape == (cfg["N"], cfg["planes"], Ho, Wo), out.shape

        ref = _ref_forward(x, params, in_planes=cfg["in_planes"],
                           planes=cfg["planes"], stride=cfg["stride"])
        ref = jax.block_until_ready(ref)
        err = float(jnp.max(jnp.abs(out - ref)))
        assert jnp.allclose(out, ref, atol=1e-2, rtol=1e-2), (i, err)

    print("KERNEL_OK")
</pallas_src>

<mosaic_0001>
module attributes {stable_mosaic.version = 11 : i64} {
  func.func @_stats_kernel(%arg0: i32, %arg1: memref<1x16x16x4xf32, #tpu.memory_space<vmem>>, %arg2: memref<1x2x4xf32, #tpu.memory_space<vmem>>) attributes {dimension_semantics = [#tpu.dimension_semantics<parallel>], iteration_bounds = array<i64: 2>, scalar_prefetch = 0 : i64, scratch_operands = 0 : i64, tpu.core_type = #tpu.core_type<tc>, window_params = [{transform_indices = @transform_0, window_bounds = array<i64: 1, 16, 16, 4>}, {transform_indices = @transform_1, window_bounds = array<i64: 1, 2, 4>}]} {
    %c0 = arith.constant 0 : index
    %c0_0 = arith.constant 0 : index
    %c0_1 = arith.constant 0 : index
    %c0_2 = arith.constant 0 : index
    %0 = vector.load %arg1[%c0, %c0_0, %c0_1, %c0_2] : memref<1x16x16x4xf32, #tpu.memory_space<vmem>>, vector<1x16x16x4xf32>
    %1 = vector.shape_cast %0 : vector<1x16x16x4xf32> to vector<16x16x4xf32>
    %2 = vector.shape_cast %1 : vector<16x16x4xf32> to vector<256x4xf32>
    %cst = arith.constant dense<0.000000e+00> : vector<4xf32>
    %3 = vector.multi_reduction <add>, %2, %cst [0] : vector<256x4xf32> to vector<4xf32>
    %4 = vector.shape_cast %3 : vector<4xf32> to vector<1x4xf32>
    %5 = arith.mulf %2, %2 : vector<256x4xf32>
    %cst_3 = arith.constant dense<0.000000e+00> : vector<4xf32>
    %6 = vector.multi_reduction <add>, %5, %cst_3 [0] : vector<256x4xf32> to vector<4xf32>
    %7 = vector.shape_cast %6 : vector<4xf32> to vector<1x4xf32>
    %8 = tpu.concatenate %4, %7 in 0 : vector<1x4xf32>, vector<1x4xf32> -> vector<2x4xf32>
    %c0_4 = arith.constant 0 : index
    %c0_5 = arith.constant 0 : index
    %c0_6 = arith.constant 0 : index
    %9 = vector.load %arg2[%c0_4, %c0_5, %c0_6] : memref<1x2x4xf32, #tpu.memory_space<vmem>>, vector<1x2x4xf32>
    %10 = vector.shape_cast %9 : vector<1x2x4xf32> to vector<2x4xf32>
    %11 = vector.shape_cast %8 : vector<2x4xf32> to vector<1x2x4xf32>
    tpu.vector_store %arg2[%c0_4, %c0_5, %c0_6], %11 {strides = array<i32>} : memref<1x2x4xf32, #tpu.memory_space<vmem>>, vector<1x2x4xf32>,
    return
  }
  func.func @transform_0(%arg0: i32) -> (i32, i32, i32, i32) {
    %c0_i32 = arith.constant 0 : i32
    %c0_i32_0 = arith.constant 0 : i32
    %c0_i32_1 = arith.constant 0 : i32
    %c0_i32_2 = arith.constant 0 : i32
    return %arg0, %c0_i32, %c0_i32_0, %c0_i32_1 : i32, i32, i32, i32
  }
  func.func @transform_1(%arg0: i32) -> (i32, i32, i32) {
    %c0_i32 = arith.constant 0 : i32
    %c0_i32_0 = arith.constant 0 : i32
    %c0_i32_1 = arith.constant 0 : i32
    return %arg0, %c0_i32, %c0_i32_0 : i32, i32, i32
  }
}

</mosaic_0001>

<bundles_post_ra>
// kernel: tpu_custom_call.1
= control target key start
LH: loop header
LB: loop body
LE: loop exit
PB: predicated region body
PF: predicated region fallthrough
CT: control target
= control target key end

     0   :  { %6 = vsyncpa [#allocation3], 0  ;;  %s719_s0 = inlined_call_operand.vmem [shape: f32[2,16,16,4], index: 0, kind: input, shape index: {}]   ;;  %s720_s1 = inlined_call_operand.hbm [shape: f32[2,2,4], index: 1, kind: output, shape index: {}]  }
   0x1   :  { %8 = vsyncpa [#allocation3 + $0x1], 0  ;;  %s521_s6 = smov 0   ;;  %s523_s7 = smov 0  }
   0x2   :  { %s525_s8 = smov 0   ;;  %s527_s9 = smov 0  }
   0x3 LB: > { %s542_s10 = sadd.s32 4294967295, %s508_s9   ;;  %s395_s11 = sadd.s32 4294967294, %s508_s9   ;;  %s508_s9 = sphi %s527_s9, %s726_s9   ;;  %s504_s8 = sphi %s525_s8, %s725_s8   ;;  %s500_s7 = sphi %s523_s7, %s724_s7   ;;  %s496_s6 = sphi %s521_s6, %s723_s6  }
   0x4   : > { %s546_s12 = sadd.s32 1, %s508_s9   ;;  %s47_s13 = sadd.s32 1, %s504_s8 }
   0x5   : > { %s44_s14 = ssub.s32 %s508_s9, %s546_s12  ;;  %p57_p0 = scmp.ne.s32.totalorder %s504_s8, %s500_s7 }
   0x6   : > { %p45_p1 = scmp.eq.s32.totalorder %s44_s14, 0  ;;  %p58_p2 = scmp.eq.s32.totalorder %s542_s10, 1 }
   0x7   : > { %p63_p3 = scmp.ne.s32.totalorder %s500_s7, %s496_s6  ;;  %p64_p4 = scmp.eq.s32.totalorder %s395_s11, 1 }
   0x8   : > { %s557_s15 = scalar_select %p45_p1, %s504_s8, %s47_s13  }
   0x9   : > { %p559_p5 = por %p58_p2, %p57_p0  ;;  %p563_p6 = por %p64_p4, %p63_p3 }
   0xa   : > { %p398_p7 = scmp.ge.s32.totalorder %s508_s9, 1  ;;  %p90_p8 = scmp.lt.s32.totalorder %s508_s9, 3 }
   0xc   : > { %p91_p9 = pnand %p398_p7, %p90_p8 }
   0xd   : > { %p110_p10 = scmp.lt.s32.totalorder (!%p91_p9), %s542_s10, 1  ;;  %vm147_vm0 = vcmask (!%p91_p9), 31744   ;;  %s107_s23 = sand.u32 (!%p91_p9), 1, %s500_s7   ;;  %vm318_vm1 = vcmask (!%p91_p9), 1040384   ;;  %vm320_vm2 = vcmask (!%p91_p9), 25600  }
   0xe   : > { %94 = sbr.rel (%p91_p9) target bundleno = 121 (0x79), region = 24  ;;  %s399_s24 = sshll.u32 (!%p91_p9), %s107_s23, 1 }
   0xf   : > { %s403_s25 = sshll.u32 (!%p91_p9), %s542_s10, 5  ;;  %s109_s26 = scalar_lea.vmem (!%p91_p9), [#allocation2], %s399_s24 }
  0x10   : > { %s336_s27 = sshll.u32 (!%p91_p9), %s109_s26, 4  ;;  %s677_s30 = scalar_lea.hbm (!%p91_p9), %s720_s1, %s403_s25  ;;  %s679_s27 = int_to_ptr.vmem [resolvable:$true] %s336_s27 }
  0x11   : > { %s323_s2 = scalar_lea.sflag (!%p91_p9), [#allocation3], %s107_s23  ;;  %s446_s3 = scalar_lea.vmem (!%p91_p9), %s679_s27, 32 }
  0x12   : > { %p447_p11 = scmp.ne.s32.totalorder (!%p91_p9), %s679_s27, %s446_s3  ;;  %s510_s4 = smov (!%p91_p9), [#allocation2]  }
  0x13   : > { %s450_s5 = sshll.u32 (!%p91_p9), %s510_s4, 4  ;;  %s451_s5 = int_to_ptr.vmem [resolvable:$false] %s450_s5 }
  0x14   : > { %p448_p12 = pnand (!%p91_p9), %p447_p11, %p559_p5  ;;  %p453_p0 = scmp.lt.s32.totalorder (!%p91_p9), %s679_s27, %s451_s5 }
  0x15   : > { %s111_s18 = scalar_select %p110_p10, %s542_s10, 1 }
  0x16   : > { %p449_p13 = pneg %p448_p12  ;;  %s452_s10 = scalar_lea.vmem %s451_s5, 64 }
  0x17   : > { %s406_s19 = sshll.u32 %s111_s18, 8  ;;  %p454_p1 = scmp.lt.s32.totalorder %s452_s10, %s446_s3 }
  0x18   : > { %s574_s22 = scalar_lea.vmem %s719_s0, %s406_s19 }
  0x19   : > { %v115_v0 = vld [vmem:[%s574_s22] sm:$0xff]  ;;  %v116_v1 = vld [vmem:[%s574_s22 + $0x8] sm:$0xff]  ;;  %v117_v2 = vld [vmem:[%s574_s22 + $0x10] sm:$0xff]  ;;  %p455_p2 = por %p454_p1, %p453_p0 }
  0x1a   : > { %v148_v3 = vsel %vm147_vm0, %v115_v0, 0.0  ;;  %v149_v4 = vsel %vm147_vm0, %v116_v1, 0.0  ;;  %v151_v5 = vsel %vm147_vm0, %v117_v2, 0.0  ;;  %v118_v6 = vld [vmem:[%s574_s22 + $0x18] sm:$0xff]  ;;  %v119_v9 = vld [vmem:[%s574_s22 + $0x20] sm:$0xff]  ;;  %v120_v12 = vld [vmem:[%s574_s22 + $0x28] sm:$0xff]  ;;  %v217_v27 = vmul.f32 %v115_v0, %v115_v0 }
  0x1b   : > { %v150_v7 = vadd.f32 %v149_v4, %v148_v3  ;;  %v153_v8 = vsel %vm147_vm0, %v118_v6, 0.0  ;;  %v155_v11 = vsel %vm147_vm0, %v119_v9, 0.0  ;;  %v157_v14 = vsel %vm147_vm0, %v120_v12, 0.0  ;;  %v121_v15 = vld [vmem:[%s574_s22 + $0x30] sm:$0xff]  ;;  %v122_v18 = vld [vmem:[%s574_s22 + $0x38] sm:$0xff]  ;;  %v123_v21 = vld [vmem:[%s574_s22 + $0x40] sm:$0xff]  ;;  %p456_p3 = pnand %p455_p2, %p449_p13 }
  0x1c   : > { %v159_v17 = vsel %vm147_vm0, %v121_v15, 0.0  ;;  %v161_v20 = vsel %vm147_vm0, %v122_v18, 0.0  ;;  %v163_v23 = vsel %vm147_vm0, %v123_v21, 0.0  ;;  %v124_v24 = vld [vmem:[%s574_s22 + $0x48] sm:$0xff]  ;;  %v218_v28 = vmul.f32 %v116_v1, %v116_v1  ;;  %v125_v30 = vld [vmem:[%s574_s22 + $0x50] sm:$0xff]  ;;  %v126_v32 = vld [vmem:[%s574_s22 + $0x58] sm:$0xff] }
  0x1d   : > { %v152_v10 = vadd.f32 %v151_v5, %v150_v7  ;;  %v165_v26 = vsel %vm147_vm0, %v124_v24, 0.0  ;;  %v219_v29 = vmul.f32 %v117_v2, %v117_v2  ;;  %v167_v33 = vsel %vm147_vm0, %v125_v30, 0.0  ;;  %v127_v41 = vld [vmem:[%s574_s22 + $0x60] sm:$0xff]  ;;  %v128_v47 = vld [vmem:[%s574_s22 + $0x68] sm:$0xff]  ;;  %v129_v53 = vld [vmem:[%s574_s22 + $0x70] sm:$0xff] }
  0x1e   : > { %v220_v34 = vmul.f32 %v118_v6, %v118_v6  ;;  %v169_v36 = vsel %vm147_vm0, %v126_v32, 0.0  ;;  %v221_v37 = vmul.f32 %v119_v9, %v119_v9  ;;  %v249_v38 = vsel %vm147_vm0, %v217_v27, 0.0  ;;  %v130_v59 = vld [vmem:[%s574_s22 + $0x78] sm:$0xff]  ;;  %v131_v1 = vld [vmem:[%s574_s22 + $0x80] sm:$0xff]  ;;  %v132_v7 = vld [vmem:[%s574_s22 + $0x88] sm:$0xff] }
  0x1f   : > { %v154_v13 = vadd.f32 %v153_v8, %v152_v10  ;;  %v250_v39 = vsel %vm147_vm0, %v218_v28, 0.0  ;;  %v252_v40 = vsel %vm147_vm0, %v219_v29, 0.0  ;;  %v171_v44 = vsel %vm147_vm0, %v127_v41, 0.0 }
  0x20   : > { %v251_v43 = vadd.f32 %v250_v39, %v249_v38  ;;  %v222_v45 = vmul.f32 %v120_v12, %v120_v12  ;;  %v254_v46 = vsel %vm147_vm0, %v220_v34, 0.0  ;;  %v173_v50 = vsel %vm147_vm0, %v128_v47, 0.0 }
  0x21   : > { %v156_v16 = vadd.f32 %v155_v11, %v154_v13  ;;  %v223_v51 = vmul.f32 %v121_v15, %v121_v15  ;;  %v256_v52 = vsel %vm147_vm0, %v221_v37, 0.0  ;;  %v175_v56 = vsel %vm147_vm0, %v129_v53, 0.0  ;;  %v133_v13 = vld [vmem:[%s574_s22 + $0x90] sm:$0xff] }
  0x22   : > { %v253_v49 = vadd.f32 %v252_v40, %v251_v43  ;;  %v224_v57 = vmul.f32 %v122_v18, %v122_v18  ;;  %v258_v58 = vsel %vm147_vm0, %v222_v45, 0.0  ;;  %v177_v62 = vsel %vm147_vm0, %v130_v59, 0.0  ;;  %v137_v37 = vld [vmem:[%s574_s22 + $0xb0] sm:$0xff]  ;;  %v138_v43 = vld [vmem:[%s574_s22 + $0xb8] sm:$0xff] }
  0x23   : > { %v158_v19 = vadd.f32 %v157_v14, %v156_v16  ;;  %v225_v63 = vmul.f32 %v123_v21, %v123_v21  ;;  %v260_v0 = vsel %vm147_vm0, %v223_v51, 0.0  ;;  %v179_v4 = vsel %vm147_vm0, %v131_v1, 0.0 }
  0x24   : > { %v255_v55 = vadd.f32 %v254_v46, %v253_v49  ;;  %v226_v5 = vmul.f32 %v124_v24, %v124_v24  ;;  %v262_v6 = vsel %vm147_vm0, %v224_v57, 0.0  ;;  %v181_v10 = vsel %vm147_vm0, %v132_v7, 0.0  ;;  %v139_v49 = vld [vmem:[%s574_s22 + $0xc0] sm:$0xff] }
  0x25   : > { %v160_v22 = vadd.f32 %v159_v17, %v158_v19  ;;  %v227_v11 = vmul.f32 %v125_v30, %v125_v30  ;;  %v264_v12 = vsel %vm147_vm0, %v225_v63, 0.0  ;;  %v183_v16 = vsel %vm147_vm0, %v133_v13, 0.0  ;;  %v134_v19 = vld [vmem:[%s574_s22 + $0x98] sm:$0xff] }
  0x26   : > { %v257_v61 = vadd.f32 %v256_v52, %v255_v55  ;;  %v228_v17 = vmul.f32 %v126_v32, %v126_v32  ;;  %v266_v18 = vsel %vm147_vm0, %v226_v5, 0.0  ;;  %v230_v29 = vmul.f32 %v128_v47, %v128_v47  ;;  %v140_v55 = vld [vmem:[%s574_s22 + $0xc8] sm:$0xff] }
  0x27   : > { %v162_v25 = vadd.f32 %v161_v20, %v160_v22  ;;  %v185_v22 = vsel %vm147_vm0, %v134_v19, 0.0  ;;  %v268_v24 = vsel %vm147_vm0, %v227_v11, 0.0  ;;  %v191_v40 = vsel %vm147_vm0, %v137_v37, 0.0 }
  0x28   : > { %v259_v3 = vadd.f32 %v258_v58, %v257_v61  ;;  %v270_v30 = vsel %vm147_vm0, %v228_v17, 0.0  ;;  %v193_v46 = vsel %vm147_vm0, %v138_v43, 0.0  ;;  %v233_v47 = vmul.f32 %v131_v1, %v131_v1  ;;  %v141_v61 = vld [vmem:[%s574_s22 + $0xd0] sm:$0xff] }
  0x29   : > { %v164_v31 = vadd.f32 %v163_v23, %v162_v25  ;;  %v229_v23 = vmul.f32 %v127_v41, %v127_v41  ;;  %v135_v25 = vld [vmem:[%s574_s22 + $0xa0] sm:$0xff]  ;;  %v232_v41 = vmul.f32 %v130_v59, %v130_v59  ;;  %v195_v52 = vsel %vm147_vm0, %v139_v49, 0.0 }
  0x2a   : > { %v261_v9 = vadd.f32 %v260_v0, %v259_v3  ;;  %v187_v28 = vsel %vm147_vm0, %v135_v25, 0.0  ;;  %v197_v58 = vsel %vm147_vm0, %v140_v55, 0.0  ;;  %v235_v59 = vmul.f32 %v133_v13, %v133_v13  ;;  %v142_v3 = vld [vmem:[%s574_s22 + $0xd8] sm:$0xff] }
  0x2b   : > { %v166_v35 = vadd.f32 %v165_v26, %v164_v31  ;;  %v136_v31 = vld [vmem:[%s574_s22 + $0xa8] sm:$0xff]  ;;  %v199_v0 = vsel %vm147_vm0, %v141_v61, 0.0  ;;  %v236_v1 = vmul.f32 %v134_v19, %v134_v19  ;;  %v239_v19 = vmul.f32 %v137_v37, %v137_v37 }
  0x2c   : > { %v263_v15 = vadd.f32 %v262_v6, %v261_v9  ;;  %v189_v34 = vsel %vm147_vm0, %v136_v31, 0.0  ;;  %v201_v6 = vsel %vm147_vm0, %v142_v3, 0.0  ;;  %v143_v9 = vld [vmem:[%s574_s22 + $0xe0] sm:$0xff]  ;;  %v238_v13 = vmul.f32 %v136_v31, %v136_v31 }
  0x2d   : > { %v168_v42 = vadd.f32 %v167_v33, %v166_v35  ;;  %v231_v35 = vmul.f32 %v129_v53, %v129_v53  ;;  %v234_v53 = vmul.f32 %v132_v7, %v132_v7  ;;  %v237_v7 = vmul.f32 %v135_v25, %v135_v25  ;;  %v145_v25 = vld [vmem:[%s574_s22 + $0xf0] sm:$0xff] }
  0x2e   : > { %v265_v21 = vadd.f32 %v264_v12, %v263_v15  ;;  %v203_v12 = vsel %vm147_vm0, %v143_v9, 0.0  ;;  %v144_v15 = vld [vmem:[%s574_s22 + $0xe8] sm:$0xff] }
  0x2f   : > { %v170_v48 = vadd.f32 %v169_v36, %v168_v42  ;;  %v272_v36 = vsel %vm147_vm0, %v229_v23, 0.0  ;;  %v274_v42 = vsel %vm147_vm0, %v230_v29, 0.0  ;;  %v240_v23 = vmul.f32 %v138_v43, %v138_v43 }
  0x30   : > { %v267_v27 = vadd.f32 %v266_v18, %v265_v21  ;;  %v205_v18 = vsel %vm147_vm0, %v144_v15, 0.0  ;;  %v241_v29 = vmul.f32 %v139_v49, %v139_v49 }
  0x31   : > { %v172_v54 = vadd.f32 %v171_v44, %v170_v48  ;;  %v276_v48 = vsel %vm147_vm0, %v231_v35, 0.0 }
  0x32   : > { %v269_v33 = vadd.f32 %v268_v24, %v267_v27  ;;  %v290_v24 = vsel %vm147_vm0, %v238_v13, 0.0 }
  0x33   : > { %v174_v60 = vadd.f32 %v173_v50, %v172_v54  ;;  %v278_v54 = vsel %vm147_vm0, %v232_v41, 0.0  ;;  %v244_v41 = vmul.f32 %v142_v3, %v142_v3 }
  0x34   : > { %v271_v39 = vadd.f32 %v270_v30, %v269_v33  ;;  %v292_v30 = vsel %vm147_vm0, %v239_v19, 0.0  ;;  %v294_v33 = vsel %vm147_vm0, %v240_v23, 0.0 }
  0x35   : > { %v176_v2 = vadd.f32 %v175_v56, %v174_v60  ;;  %v280_v60 = vsel %vm147_vm0, %v233_v47, 0.0  ;;  %v302_v49 = vsel %vm147_vm0, %v244_v41, 0.0 }
  0x36   : > { %v273_v45 = vadd.f32 %v272_v36, %v271_v39  ;;  %v296_v39 = vsel %vm147_vm0, %v241_v29, 0.0 }
  0x37   : > { %v178_v8 = vadd.f32 %v177_v62, %v176_v2  ;;  %v282_v2 = vsel %vm147_vm0, %v234_v53, 0.0 }
  0x38   : > { %v275_v51 = vadd.f32 %v274_v42, %v273_v45  ;;  %v245_v45 = vmul.f32 %v143_v9, %v143_v9 }
  0x39   : > { %v180_v14 = vadd.f32 %v179_v4, %v178_v8  ;;  %v284_v8 = vsel %vm147_vm0, %v235_v59, 0.0 }
  0x3a   : > { %v277_v57 = vadd.f32 %v276_v48, %v275_v51  ;;  %v246_v48 = vmul.f32 %v144_v15, %v144_v15  ;;  %v304_v53 = vsel %vm147_vm0, %v245_v45, 0.0 }
  0x3b   : > { %v182_v20 = vadd.f32 %v181_v10, %v180_v14  ;;  %v286_v14 = vsel %vm147_vm0, %v236_v1, 0.0 }
  0x3c   : > { %v279_v63 = vadd.f32 %v278_v54, %v277_v57 }
  0x3d   : > { %v184_v26 = vadd.f32 %v183_v16, %v182_v20  ;;  %v288_v20 = vsel %vm147_vm0, %v237_v7, 0.0 }
  0x3e   : > { %v281_v5 = vadd.f32 %v280_v60, %v279_v63 }
  0x3f   : > { %v186_v32 = vadd.f32 %v185_v22, %v184_v26 }
  0x40   : > { %v283_v11 = vadd.f32 %v282_v2, %v281_v5 }
  0x41   : > { %v188_v38 = vadd.f32 %v187_v28, %v186_v32  ;;  %v207_v28 = vsel %vm147_vm0, %v145_v25, 0.0  ;;  %v242_v32 = vmul.f32 %v140_v55, %v140_v55 }
  0x42   : > { %v285_v17 = vadd.f32 %v284_v8, %v283_v11 }
  0x43   : > { %v190_v44 = vadd.f32 %v189_v34, %v188_v38  ;;  %v146_v34 = vld [vmem:[%s574_s22 + $0xf8] sm:$0xff]  ;;  %v243_v38 = vmul.f32 %v141_v61, %v141_v61  ;;  %v298_v42 = vsel %vm147_vm0, %v242_v32, 0.0 }
  0x44   : > { %v287_v22 = vadd.f32 %v286_v14, %v285_v17  ;;  %v209_v37 = vsel %vm147_vm0, %v146_v34, 0.0  ;;  %v248_v55 = vmul.f32 %v146_v34, %v146_v34 }
  0x45   : > { %v192_v50 = vadd.f32 %v191_v40, %v190_v44 }
  0x46   : > { %v289_v27 = vadd.f32 %v288_v20, %v287_v22  ;;  %v310_v61 = vsel %vm147_vm0, %v248_v55, 0.0 }
  0x47   : > { %v194_v56 = vadd.f32 %v193_v46, %v192_v50  ;;  %v300_v46 = vsel %vm147_vm0, %v243_v38, 0.0 }
  0x48   : > { %v291_v31 = vadd.f32 %v290_v24, %v289_v27 }
  0x49   : > { %v196_v62 = vadd.f32 %v195_v52, %v194_v56  ;;  %v247_v52 = vmul.f32 %v145_v25, %v145_v25  ;;  %v306_v56 = vsel %vm147_vm0, %v246_v48, 0.0 }
  0x4a   : > { %v293_v36 = vadd.f32 %v292_v30, %v291_v31 }
  0x4b   : > { %v198_v4 = vadd.f32 %v197_v58, %v196_v62  ;;  %v308_v59 = vsel %vm147_vm0, %v247_v52, 0.0 }
  0x4c   : > { %v295_v40 = vadd.f32 %v294_v33, %v293_v36 }
  0x4d   : > { %v200_v10 = vadd.f32 %v199_v0, %v198_v4 }
  0x4e   : > { %v297_v44 = vadd.f32 %v296_v39, %v295_v40 }
  0x4f   : > { %v202_v16 = vadd.f32 %v201_v6, %v200_v10 }
  0x50   : > { %v299_v47 = vadd.f32 %v298_v42, %v297_v44 }
  0x51   : > { %v204_v21 = vadd.f32 %v203_v12, %v202_v16 }
  0x52   : > { %v301_v51 = vadd.f32 %v300_v46, %v299_v47 }
  0x53   : > { %v206_v26 = vadd.f32 %v205_v18, %v204_v21 }
  0x54   : > { %v303_v54 = vadd.f32 %v302_v49, %v301_v51 }
  0x55   : > { %v208_v35 = vadd.f32 %v207_v28, %v206_v26 }
  0x56   : > { %v305_v58 = vadd.f32 %v304_v53, %v303_v54 }
  0x57   : > { %v210_v43 = vadd.f32 %v209_v37, %v208_v35 }
  0x58   : > { %v307_v60 = vadd.f32 %v306_v56, %v305_v58 }
  0x59   : > { %v211_v50 = vrot.slane %v210_v43, 4 }
  0x5a   : > { %v309_v63 = vadd.f32 %v308_v59, %v307_v60 }
  0x5b   : > { %v212_v57 = vadd.f32 %v211_v50, %v210_v43 }
  0x5c   : > { %v311_v0 = vadd.f32 %v310_v61, %v309_v63 }
  0x5d   : > { %v213_v62 = vrot.slane %v212_v57, 2 }
  0x5e   : > { %v312_v2 = vrot.slane %v311_v0, 4 }
  0x5f   : > { %v214_v1 = vadd.f32 %v213_v62, %v212_v57 }
  0x60   : > { %v313_v3 = vadd.f32 %v312_v2, %v311_v0 }
  0x61   : > { %v215_v4 = vrot.slane %v214_v1, 1 }
  0x62   : > { %v314_v5 = vrot.slane %v313_v3, 2 }
  0x63   : > { %v216_v7 = vadd.f32 %v215_v4, %v214_v1 }
  0x64   : > { %v315_v6 = vadd.f32 %v314_v5, %v313_v3 }
  0x66   : > { %v316_v8 = vrot.slane %v315_v6, 1 }
  0x68   : > { %v317_v9 = vadd.f32 %v316_v8, %v315_v6 }
  0x6a   : > { %v319_v10 = vsel %vm318_vm1, %v216_v7, %v317_v9 }
  0x6b   : > { %321 = vst.msk [vmem:[%s109_s26] sm:$0x3] %vm320_vm2, %v319_v10 }
  0x6c   : > { %459 = shalt.err (!%p456_p3)
}
  0x6d   : > { %s460_s11 = scalar_lea.hbm %s677_s30, 32  ;;  %s464_s18 = scalar_lea.hbm %s720_s1, 64 }
  0x6e   : > { %p461_p4 = scmp.ne.s32.totalorder %s677_s30, %s460_s11  ;;  %p465_p9 = scmp.lt.u32.totalorder %s677_s30, %s720_s1 }
  0x6f   : > { %p466_p10 = scmp.lt.u32.totalorder %s464_s18, %s460_s11  ;;  %p468_p12 = scmp.lt.u32.totalorder %s460_s11, %s677_s30 }
  0x70   : > { %p462_p7 = pnand %p461_p4, %p559_p5 }
  0x71   : > { %p467_p11 = por %p466_p10, %p465_p9 }
  0x72   : > { %p463_p8 = pneg %p462_p7 }
  0x73   : > { %p469_p13 = por %p468_p12, %p467_p11 }
  0x75   : > { %p470_p0 = pnand %p469_p13, %p463_p8 }
  0x77   : > { %473 = shalt.err (!%p470_p0)
}
  0x78   : > { %407 = dma.vmem_to_hbm [thread:$0]  (%p559_p5), %s679_s27, 32, %s677_s30, %s323_s2  }
  0x79 PF: > { %p413_p1 = scmp.ge.s32.totalorder %s508_s9, 2  ;;  %s348_s21 = sand.u32 1, %s496_s6  }
  0x7a   : > { %s349_s22 = scalar_lea.sflag [#allocation3], %s348_s21 }
  0x7b   : > { %p410_p2 = pnand %p413_p1, %p563_p6 }
  0x7d   : > { %491 = dma.done.wait (!%p410_p2), %s349_s22, 32  }
  0x7e   : > { %493 = vsyncadd (!%p410_p2), %s349_s22, 4294967264  ;;  %p11_p3 = scmp.ge.s32.totalorder %s546_s12, 4   ;;  %s723_s6 = smov %s500_s7 }
  0x7f   : > { %s724_s7 = smov %s504_s8  ;;  %s725_s8 = smov %s557_s15 }
  0x80   : > { %s726_s9 = smov %s546_s12  ;;  %13 = sbr.rel (!%p11_p3) target bundleno = 3 (0x3), region = 59 }
  0x87   :  { %354 = vsyncpa [#allocation3], 1 }
  0x88   :  { %356 = vsyncpa [#allocation3 + $0x1], 1 }

</bundles_post_ra>
